<compile_context>
chip_gen: v7x
topology: tpu7x:2x2x1
jax: 0.10.0
libtpu: 0.0.40
codegen_flags: <defaults>
</compile_context>

<pallas_src>
import jax
import jax.numpy as jnp
from jax.experimental import pallas as pl
from jax.experimental.pallas import tpu as pltpu

EPS_BN = 1e-5


# --------------------------- kernels ---------------------------

def _row_stats_kernel(x_ref, sum_ref, sq_ref):
    """Pass 1: accumulate per-(b, c)-row sum / sum-of-squares along the HW axis."""
    h = pl.program_id(1)

    @pl.when(h == 0)
    def _():
        sum_ref[...] = jnp.zeros_like(sum_ref)
        sq_ref[...] = jnp.zeros_like(sq_ref)

    # TODO(synk): E[x^2]-E[x]^2 can lose precision for large-mean activations;
    # a shifted (first-tile-mean) / Welford accumulation would be more robust.
    x = x_ref[...].astype(jnp.float32)                       # (rt, hw_tile)
    sum_ref[...] += jnp.sum(x, axis=1, keepdims=True)        # (rt, 1)
    sq_ref[...] += jnp.sum(x * x, axis=1, keepdims=True)


def _normalize_kernel(x_ref, scale_ref, shift_ref, o_ref):
    """Pass 2: out = x * scale + shift (f32 FMA, cast only on the store)."""
    x = x_ref[...].astype(jnp.float32)                       # (rt, hw_tile)
    o_ref[...] = (x * scale_ref[...] + shift_ref[...]).astype(o_ref.dtype)


# --------------------------- wrapper ---------------------------

def _round_up(a, m):
    return (a + m - 1) // m * m


def _vmem_capacity_bytes():
    try:
        return int(pltpu.get_tpu_info().vmem_capacity_bytes)
    except Exception:
        return 64 << 20   # conservative (v7x per-TensorCore)


def _choose_tiles(rows_pad, hw_pad, itemsize, block_budget_bytes):
    """Largest (row_tile, hw_tile) block within budget; row_tile | rows_pad
    (multiple of the sublane pack), hw_tile | hw_pad (multiple of 128)."""
    sub = max(8, 32 // itemsize)
    hw_cands = [h for h in range(128, hw_pad + 1, 128) if hw_pad % h == 0]
    rt_max = min(rows_pad, max(sub, block_budget_bytes // (128 * itemsize)))
    rt_cands = [r for r in range(sub, rt_max + 1, sub) if rows_pad % r == 0]
    best, best_key = (sub, 128), (-1, -1)
    for rt in rt_cands:
        fit = [h for h in hw_cands if rt * h * itemsize <= block_budget_bytes]
        if not fit:
            continue
        hw = max(fit)
        key = (rt * hw, hw)          # biggest block first, then most lane-dense
        if key > best_key:
            best_key, best = key, (rt, hw)
    return best


def adaptive_batch_norm_2d(x, embed, w_gamma, w_beta, *, eps=EPS_BN,
                           hw_tile=None, row_tile=None):
    """x: (B, C, H, W) NCHW; embed: (B, E); w_gamma/w_beta: (C, E) nn.Linear weights."""
    B, C, H, W = x.shape
    HW = H * W
    R = B * C
    itemsize = x.dtype.itemsize
    sub = max(8, 32 // itemsize)

    # Row-major 2-D view; zero-pad to (sublane, lane) multiples only when needed.
    # Zero padding contributes 0 to sum/sumsq (true counts used below) and the
    # padded outputs are sliced away, so no masking is required in-kernel.
    R_pad = _round_up(R, sub)
    HW_pad = _round_up(HW, 128)
    x2 = x.reshape(R, HW)
    if R_pad != R or HW_pad != HW:
        x2 = jnp.pad(x2, ((0, R_pad - R), (0, HW_pad - HW)))

    # VMEM-aware tile choice: Pass 2 keeps ~4 x-sized blocks resident
    # (x in + out, each double-buffered).
    vmem_cap = _vmem_capacity_bytes()
    block_budget = min((vmem_cap - (16 << 20)) // 4, 8 << 20)
    rt_auto, hw_auto = _choose_tiles(R_pad, HW_pad, itemsize, block_budget)
    rt = row_tile if row_tile is not None else rt_auto
    hwt = hw_tile if hw_tile is not None else hw_auto
    assert R_pad % rt == 0 and (rt % 8 == 0 or rt == R_pad)
    assert HW_pad % hwt == 0 and hwt % 128 == 0
    block_bytes = rt * hwt * itemsize
    vmem_limit = int(min(vmem_cap - (8 << 20), 4 * block_bytes + (16 << 20)))

    grid = (R_pad // rt, HW_pad // hwt)

    # ---- Pass 1: per-row sum / sum-of-squares (f32 accumulation). ----
    row_sum, row_sq = pl.pallas_call(
        _row_stats_kernel,
        out_shape=(jax.ShapeDtypeStruct((R_pad, 1), jnp.float32),
                   jax.ShapeDtypeStruct((R_pad, 1), jnp.float32)),
        grid=grid,
        in_specs=[pl.BlockSpec((rt, hwt), lambda r, h: (r, h))],
        out_specs=(pl.BlockSpec((rt, 1), lambda r, h: (r, 0)),
                   pl.BlockSpec((rt, 1), lambda r, h: (r, 0))),
        compiler_params=pltpu.CompilerParams(
            dimension_semantics=("parallel", "arbitrary"),
            vmem_limit_bytes=vmem_limit),
    )(x2)

    # ---- Tiny finalize in plain XLA (runs once, trivially cheap). ----
    count = jnp.float32(B * HW)                                   # true element count
    ch_sum = row_sum[:R, 0].reshape(B, C).sum(axis=0)             # (C,)
    ch_sq = row_sq[:R, 0].reshape(B, C).sum(axis=0)
    mean = ch_sum / count
    var = jnp.maximum(ch_sq / count - mean * mean, 0.0)           # biased variance
    inv_std = jax.lax.rsqrt(var + eps)

    emb = embed.astype(jnp.float32)
    gamma1 = emb @ w_gamma.astype(jnp.float32).T + 1.0            # (B, C), '+1' folded
    beta = emb @ w_beta.astype(jnp.float32).T
    scale = (gamma1 * inv_std).reshape(R, 1)                      # per-(b, c) row, f32
    shift = (beta - gamma1 * (mean * inv_std)).reshape(R, 1)
    if R_pad != R:
        scale = jnp.pad(scale, ((0, R_pad - R), (0, 0)))
        shift = jnp.pad(shift, ((0, R_pad - R), (0, 0)))

    # ---- Pass 2: out = x * scale + shift, fully parallel streaming FMA. ----
    out2 = pl.pallas_call(
        _normalize_kernel,
        out_shape=jax.ShapeDtypeStruct((R_pad, HW_pad), x.dtype),
        grid=grid,
        in_specs=[pl.BlockSpec((rt, hwt), lambda r, h: (r, h)),
                  pl.BlockSpec((rt, 1), lambda r, h: (r, 0)),
                  pl.BlockSpec((rt, 1), lambda r, h: (r, 0))],
        out_specs=pl.BlockSpec((rt, hwt), lambda r, h: (r, h)),
        compiler_params=pltpu.CompilerParams(
            dimension_semantics=("parallel", "parallel"),
            vmem_limit_bytes=vmem_limit),
    )(x2, scale, shift)

    return out2[:R, :HW].reshape(B, C, H, W)


# ---------------- parameter setup (plain-JAX glue) ----------------

def _xavier_uniform(key, shape, gain):
    fan_out, fan_in = shape  # nn.Linear weight is (out_features, in_features)
    bound = gain * (6.0 / (fan_in + fan_out)) ** 0.5
    return jax.random.uniform(key, shape, jnp.float32, -bound, bound)


def _spectral_normalize(w, key, n_power_iterations=1, eps=1e-12):
    # Mirrors torch.nn.utils.spectral_norm: u ~ N(0,1) normalized at init,
    # one power iteration per (training) forward; sigma = u^T W v.
    u = jax.random.normal(key, (w.shape[0],), jnp.float32)
    u = u / (jnp.linalg.norm(u) + eps)
    v = None
    for _ in range(n_power_iterations):
        v = w.T @ u
        v = v / (jnp.linalg.norm(v) + eps)
        u = w @ v
        u = u / (jnp.linalg.norm(u) + eps)
    sigma = u @ (w @ v)
    return w / sigma


def _reference(x, embed, w_gamma, w_beta):
    mean = x.mean(axis=(0, 2, 3), keepdims=True)
    var = ((x - mean) ** 2).mean(axis=(0, 2, 3), keepdims=True)
    xn = (x - mean) / jnp.sqrt(var + EPS_BN)
    gamma = embed @ w_gamma.T
    beta = embed @ w_beta.T
    return (gamma[:, :, None, None] + 1.0) * xn + beta[:, :, None, None]


if __name__ == "__main__":
    key = jax.random.PRNGKey(0)
    keys = jax.random.split(key, 12)

    def run_case(B, C, H, W, E, case_keys, **kw):
        kx, ke, kwg, kwb, kug, kub = case_keys
        x = jax.random.normal(kx, (B, C, H, W), jnp.float32)
        embed = jax.random.normal(ke, (B, E), jnp.float32)
        gain = 2 ** 0.5
        w_gamma = _spectral_normalize(_xavier_uniform(kwg, (C, E), gain), kug)
        w_beta = _spectral_normalize(_xavier_uniform(kwb, (C, E), gain), kub)
        out = adaptive_batch_norm_2d(x, embed, w_gamma, w_beta, **kw)
        out = jax.block_until_ready(out)
        ref = _reference(x, embed, w_gamma, w_beta)
        assert out.shape == (B, C, H, W)
        assert jnp.allclose(out, ref, atol=1e-4, rtol=1e-4), "mismatch vs reference"

    # Case 1: hw_tile=128 forces a multi-step reduction grid even at toy size.
    run_case(2, 4, 16, 16, 8, keys[:6], hw_tile=128)
    # Case 2: non-128-divisible HW (10x10) and odd B*C exercise the padding path.
    run_case(3, 5, 10, 10, 8, keys[6:])

    print("KERNEL_OK")
</pallas_src>

<mosaic_0001>
module attributes {stable_mosaic.version = 11 : i64} {
  func.func @_row_stats_kernel(%arg0: i32, %arg1: i32, %arg2: memref<8x128xf32, #tpu.memory_space<vmem>>, %arg3: memref<8x1xf32, #tpu.memory_space<vmem>>, %arg4: memref<8x1xf32, #tpu.memory_space<vmem>>) attributes {dimension_semantics = [#tpu.dimension_semantics<parallel>, #tpu.dimension_semantics<arbitrary>], iteration_bounds = array<i64: 1, 2>, scalar_prefetch = 0 : i64, scratch_operands = 0 : i64, tpu.core_type = #tpu.core_type<tc>, window_params = [{transform_indices = @transform_0, window_bounds = array<i64: 8, 128>}, {transform_indices = @transform_1, window_bounds = array<i64: 8, 1>}, {transform_indices = @transform_2, window_bounds = array<i64: 8, 1>}]} {
    %c0_i32 = arith.constant 0 : i32
    %0 = arith.cmpi eq, %arg1, %c0_i32 : i32
    %1 = arith.extui %0 : i1 to i32
    %c0_i32_0 = arith.constant 0 : i32
    %2 = arith.cmpi ne, %1, %c0_i32_0 : i32
    scf.if %2 {
      %cst_11 = arith.constant 0.000000e+00 : f32
      %15 = vector.broadcast %cst_11 : f32 to vector<8x1xf32>
      %c0_12 = arith.constant 0 : index
      %c0_13 = arith.constant 0 : index
      %16 = vector.load %arg3[%c0_12, %c0_13] : memref<8x1xf32, #tpu.memory_space<vmem>>, vector<8x1xf32>
      tpu.vector_store %arg3[%c0_12, %c0_13], %15 {strides = array<i32>} : memref<8x1xf32, #tpu.memory_space<vmem>>, vector<8x1xf32>,
      %cst_14 = arith.constant 0.000000e+00 : f32
      %17 = vector.broadcast %cst_14 : f32 to vector<8x1xf32>
      %c0_15 = arith.constant 0 : index
      %c0_16 = arith.constant 0 : index
      %18 = vector.load %arg4[%c0_15, %c0_16] : memref<8x1xf32, #tpu.memory_space<vmem>>, vector<8x1xf32>
      tpu.vector_store %arg4[%c0_15, %c0_16], %17 {strides = array<i32>} : memref<8x1xf32, #tpu.memory_space<vmem>>, vector<8x1xf32>,
    } else {
    }
    %c0 = arith.constant 0 : index
    %c0_1 = arith.constant 0 : index
    %3 = vector.load %arg2[%c0, %c0_1] : memref<8x128xf32, #tpu.memory_space<vmem>>, vector<8x128xf32>
    %c0_2 = arith.constant 0 : index
    %c0_3 = arith.constant 0 : index
    %4 = vector.load %arg3[%c0_2, %c0_3] : memref<8x1xf32, #tpu.memory_space<vmem>>, vector<8x1xf32>
    %cst = arith.constant dense<0.000000e+00> : vector<8xf32>
    %5 = vector.multi_reduction <add>, %3, %cst [1] : vector<8x128xf32> to vector<8xf32>
    %6 = vector.shape_cast %5 : vector<8xf32> to vector<8x1xf32>
    %7 = arith.addf %4, %6 : vector<8x1xf32>
    %c0_4 = arith.constant 0 : index
    %c0_5 = arith.constant 0 : index
    %8 = vector.load %arg3[%c0_4, %c0_5] : memref<8x1xf32, #tpu.memory_space<vmem>>, vector<8x1xf32>
    tpu.vector_store %arg3[%c0_4, %c0_5], %7 {strides = array<i32>} : memref<8x1xf32, #tpu.memory_space<vmem>>, vector<8x1xf32>,
    %c0_6 = arith.constant 0 : index
    %c0_7 = arith.constant 0 : index
    %9 = vector.load %arg4[%c0_6, %c0_7] : memref<8x1xf32, #tpu.memory_space<vmem>>, vector<8x1xf32>
    %10 = arith.mulf %3, %3 : vector<8x128xf32>
    %cst_8 = arith.constant dense<0.000000e+00> : vector<8xf32>
    %11 = vector.multi_reduction <add>, %10, %cst_8 [1] : vector<8x128xf32> to vector<8xf32>
    %12 = vector.shape_cast %11 : vector<8xf32> to vector<8x1xf32>
    %13 = arith.addf %9, %12 : vector<8x1xf32>
    %c0_9 = arith.constant 0 : index
    %c0_10 = arith.constant 0 : index
    %14 = vector.load %arg4[%c0_9, %c0_10] : memref<8x1xf32, #tpu.memory_space<vmem>>, vector<8x1xf32>
    tpu.vector_store %arg4[%c0_9, %c0_10], %13 {strides = array<i32>} : memref<8x1xf32, #tpu.memory_space<vmem>>, vector<8x1xf32>,
    return
  }
  func.func @transform_0(%arg0: i32, %arg1: i32) -> (i32, i32) {
    %c0_i32 = arith.constant 0 : i32
    return %arg0, %arg1 : i32, i32
  }
  func.func @transform_1(%arg0: i32, %arg1: i32) -> (i32, i32) {
    %c0_i32 = arith.constant 0 : i32
    %c0_i32_0 = arith.constant 0 : i32
    return %arg0, %c0_i32 : i32, i32
  }
  func.func @transform_2(%arg0: i32, %arg1: i32) -> (i32, i32) {
    %c0_i32 = arith.constant 0 : i32
    %c0_i32_0 = arith.constant 0 : i32
    return %arg0, %c0_i32 : i32, i32
  }
}

</mosaic_0001>

<bundles_post_ra>
// kernel: tpu_custom_call.1
= control target key start
LH: loop header
LB: loop body
LE: loop exit
PB: predicated region body
PF: predicated region fallthrough
CT: control target
= control target key end

     0   :  { %8 = vsyncpa [#allocation3], 0  ;;  %s612_s0 = inlined_call_operand.hbm [shape: f32[8,256], index: 0, kind: input, shape index: {}]   ;;  %s613_s1 = inlined_call_operand.vmem [shape: f32[8,1], index: 1, kind: output, shape index: {0}]   ;;  %s614_s2 = inlined_call_operand.vmem [shape: f32[8,1], index: 2, kind: output, shape index: {1}]  }
   0x1   :  { %10 = vsyncpa [#allocation3 + $0x1], 0  ;;  %s473_s9 = smov 0   ;;  %s475_s10 = smov 0  }
   0x2   :  { %s477_s11 = smov 0   ;;  %s479_s12 = smov 0  }
   0x3   :  { %s481_s13 = smov 0   ;;  %s483_s14 = smov 0  }
   0x4 LB: > { %s306_s15 = sadd.s32 4294967295, %s454_s14   ;;  %s25_s16 = sadd.s32 1, %s450_s13  ;;  %s454_s14 = sphi %s483_s14, %s16_s14   ;;  %s450_s13 = sphi %s481_s13, %s624_s13   ;;  %s446_s12 = sphi %s479_s12, %s623_s12   ;;  %s442_s11 = sphi %s477_s11, %s622_s11   ;;  %s438_s10 = sphi %s475_s10, %s621_s10   ;;  %s434_s9 = sphi %s473_s9, %s620_s9  }
   0x5   : > { %p26_p0 = scmp.ge.s32.totalorder %s25_s16, 2  ;;  %s37_s17 = sadd.s32 1, %s442_s11 }
   0x6   : > { %p44_p1 = scmp.ne.s32.totalorder %s442_s11, %s438_s10  ;;  %p45_p2 = scmp.eq.s32.totalorder %s454_s14, 0 }
   0x7   : > { %s626_s16 = smov (%p26_p0, %s25_s16), 0  ;;  %p50_p4 = scmp.ne.s32.totalorder %s438_s10, %s434_s9 }
   0x8   : > { %p509_p3 = por %p45_p2, %p44_p1  ;;  %s33_s19 = ssub.s32 %s450_s13, %s626_s16 }
   0x9   : > { %p51_p5 = scmp.eq.s32.totalorder %s306_s15, 0  ;;  %p35_p6 = scmp.eq.s32.totalorder %s33_s19, 0 }
   0xa   : > { %p324_p8 = scmp.lt.s32.totalorder %s454_s14, 2  ;;  %s126_s22 = sand.u32 1, %s442_s11  }
   0xb   : > { %p516_p7 = por %p51_p5, %p50_p4  ;;  %s310_s23 = sshll.u32 %s450_s13, 7 }
   0xc   : > { %s522_s21 = scalar_select %p35_p6, %s442_s11, %s37_s17  }
   0xd   : > { %s309_s24 = sshll.u32 %s126_s22, 3  ;;  %s529_s27 = scalar_lea.hbm %s612_s0, %s310_s23 }
   0xe   : > { %s130_s28 = scalar_lea.vmem [#allocation2], %s309_s24  ;;  %p533_p9 = pnand %p324_p8, %p509_p3 }
   0xf   : > { %s139_s29 = sshll.u32 %s130_s28, 4  ;;  %s127_s3 = scalar_lea.sflag [#allocation3], %s126_s22  ;;  %s537_s29 = int_to_ptr.vmem [resolvable:$true] %s139_s29 }
  0x10   : > { %s374_s4 = scalar_lea.hbm %s529_s27, 128  ;;  %p376_p13 = pneg %p533_p9 }
  0x11   : > { %p375_p12 = scmp.ne.s32.totalorder %s529_s27, %s374_s4  ;;  %s379_s7 = scalar_lea.hbm %s612_s0, 256 }
  0x12   : > { %p380_p2 = scmp.lt.u32.totalorder %s529_s27, %s612_s0  ;;  %p381_p3 = scmp.lt.u32.totalorder %s379_s7, %s374_s4 }
  0x13   : > { %p377_p0 = pnand %p376_p13, %p375_p12  ;;  %p383_p5 = scmp.lt.u32.totalorder %s374_s4, %s529_s27 }
  0x14   : > { %p382_p4 = por %p381_p3, %p380_p2 }
  0x15   : > { %p378_p1 = pneg %p377_p0 }
  0x16   : > { %p384_p6 = por %p383_p5, %p382_p4 }
  0x18   : > { %p385_p8 = pnand %p384_p6, %p378_p1 }
  0x1a   : > { %388 = shalt.err (!%p385_p8)
}
  0x1b   : > { %s389_s15 = scalar_lea.vmem %s537_s29, 128  ;;  %s456_s17 = smov [#allocation2]  }
  0x1c   : > { %p390_p12 = scmp.ne.s32.totalorder %s537_s29, %s389_s15  ;;  %s394_s18 = sshll.u32 %s456_s17, 4  ;;  %s395_s18 = int_to_ptr.vmem [resolvable:$false] %s394_s18 }
  0x1d   : > { %s396_s19 = scalar_lea.vmem %s395_s18, 256  ;;  %p397_p11 = scmp.lt.s32.totalorder %s537_s29, %s395_s18 }
  0x1e   : > { %p392_p0 = pnand %p390_p12, %p376_p13  ;;  %p398_p2 = scmp.lt.s32.totalorder %s396_s19, %s389_s15 }
  0x20   : > { %p393_p10 = pneg %p392_p0  ;;  %p399_p3 = por %p398_p2, %p397_p11 }
  0x22   : > { %p400_p4 = pnand %p399_p3, %p393_p10 }
  0x24   : > { %403 = shalt.err (!%p400_p4)
}
  0x25   : > { %323 = dma.hbm_to_vmem [thread:$0]  (!%p533_p9), %s529_s27, 128, %s537_s29, %s127_s3  }
  0x26   : > { %p618_p1 = scmp.lt.s32.totalorder %s454_s14, 3  ;;  %p619_p5 = scmp.ge.s32.totalorder %s454_s14, 1 }
  0x28   : > { %p145_p13 = pnand %p619_p5, %p618_p1 }
  0x29   : > { %s150_s22 = sand.u32 (!%p145_p13), 1, %s438_s10  }
  0x2a   : > { %148 = sbr.rel (%p145_p13) target bundleno = 209 (0xd1), region = 24  ;;  %s312_s23 = sshll.u32 (!%p145_p13), %s150_s22, 3 }
  0x2b   : > { %s151_s24 = scalar_lea.sflag (!%p145_p13), [#allocation3], %s150_s22  ;;  %s154_s25 = scalar_lea.vmem (!%p145_p13), [#allocation2], %s312_s23 }
  0x31   : > { %429 = dma.done.wait (%p516_p7), %s151_s24, 128  }
  0x32   : > { %431 = vsyncadd (%p516_p7), %s151_s24, 4294967168  ;;  %p313_p10 = scmp.ne.s32.totalorder %s446_s12, 0 }
  0x33   : > { %vm190_vm0 = vcmask (!%p313_p10), 7168   ;;  %v457_v0 = vmov (!%p313_p10), 0.0  }
  0x34   : > { %189 = sbr.rel (%p313_p10) target bundleno = 59 (0x3b), region = 32  ;;  %191 = vst.msk [vmem:[%s613_s1] sm:$0xff] (!%p313_p10), %vm190_vm0, %v457_v0  ;;  %192 = vst.msk [vmem:[%s614_s2] sm:$0xff] (!%p313_p10), %vm190_vm0, %v457_v0 }
  0x3b PF: > { %v193_v1 = vld [vmem:[%s154_s25] sm:$0xff]  ;;  %vm198_vm1 = vcmask 7168  }
  0x3c   : > { %195 = vadd.xlane.f32.xlu0 %v193_v1  ;;  %v201_v2 = vmul.f32 %v193_v1, %v193_v1  ;;  %v194_v3 = vld [vmem:[%s613_s1] sm:$0xff] }
  0x3d   : > { %v200_v6 = vld [vmem:[%s614_s2] sm:$0xff] }
  0x40   : > { %202 = vadd.xlane.f32.xlu0 %v201_v2 }
  0xc9   : > { %v196_v4 = vpop.xlane.xlu0 %195 }
  0xca   : > { %v197_v5 = vadd.f32 %v196_v4, %v194_v3 }
  0xcc   : > { %199 = vst.msk [vmem:[%s613_s1] sm:$0xff] %vm198_vm1, %v197_v5 }
  0xcd   : > { %v203_v7 = vpop.xlane.xlu0 %202 }
  0xce   : > { %v204_v8 = vadd.f32 %v203_v7, %v200_v6 }
  0xd0   : > { %205 = vst.msk [vmem:[%s614_s2] sm:$0xff] %vm198_vm1, %v204_v8 }
  0xd1 PF: > { %s16_s14 = sadd.s32 1, %s454_s14   ;;  %s620_s9 = smov %s438_s10 }
  0xd2   : > { %p13_p7 = scmp.ge.s32.totalorder %s16_s14, 4   ;;  %s621_s10 = smov %s442_s11 }
  0xd3   : > { %s622_s11 = smov %s522_s21  ;;  %s623_s12 = smov %s450_s13 }
  0xd4   : > { %s624_s13 = smov %s626_s16  ;;  %15 = sbr.rel (!%p13_p7) target bundleno = 4 (0x4), region = 80 }
  0xdb   :  { %239 = vsyncpa [#allocation3], 1 }
  0xdc   :  { %241 = vsyncpa [#allocation3 + $0x1], 1 }

</bundles_post_ra>
